<compile_context>
chip_gen: v7x
topology: tpu7x:2x2x1
jax: 0.10.0
libtpu: 0.0.40
codegen_flags: <defaults>
</compile_context>

<pallas_src>
import jax
import jax.numpy as jnp
from jax.experimental import pallas as pl
from jax.experimental.pallas import tpu as pltpu


def _classifyy_kernel(x_ref, w_ref, b_ref, o_ref):
    # x_ref: (1, tile_n)   w_ref: (c2, 1)   b_ref: (c2, 1)   o_ref: (c2, tile_n)
    x = x_ref[...].astype(jnp.float32)          # (1, tn)  -- lane-dense load
    w = w_ref[...].astype(jnp.float32)          # (c2, 1)
    b = b_ref[...].astype(jnp.float32)          # (c2, 1)
    # Linear(1, c2): rank-1 contraction == broadcasted FMA on the VPU.
    # Result (c2, tn) is lane-dense -> unmasked full-vreg stores.
    o_ref[...] = (w * x + b).astype(o_ref.dtype)


def _pick_tile_n(n, c2, *, vmem_budget_bytes=8 * 1024 * 1024, max_tile=4096):
    """Largest multiple-of-128 lane tile fitting a conservative VMEM budget.

    Budget counts double-buffered f32 input (1, tn) + output (c2, tn) tiles so
    the choice is safe even on v7x's smaller (64 MiB phys / 32 MiB scoped) VMEM.
    """
    bytes_per_lane_col = 2 * (c2 + 1) * 4          # 2x buffers, f32
    cap = (vmem_budget_bytes // bytes_per_lane_col) // 128 * 128
    cap = max(128, min(cap, max_tile))
    n_rounded = ((n + 127) // 128) * 128           # don't tile past the data
    return min(cap, max(128, n_rounded))


def classifyy_forward(x, weight, bias):
    """x: (..., 1); weight: (c2, 1); bias: (c2,). Returns (..., c2)."""
    assert x.shape[-1] == 1, "fc1 expects in_features == 1"
    c2 = weight.shape[0]
    lead = x.shape[:-1]
    n = 1
    for d in lead:
        n *= d

    out_dtype = jnp.promote_types(x.dtype, weight.dtype)

    # Lane-dense presentation: x^T is (1, N) with N on the lane axis.
    x_t = x.reshape(1, n)
    w_col = weight.reshape(c2, 1)
    b_col = bias.reshape(c2, 1)

    tile_n = _pick_tile_n(n, c2)
    grid = (pl.cdiv(n, tile_n),)                   # ragged last block handled by Pallas

    cost = pl.CostEstimate(
        flops=2 * n * c2,
        transcendentals=0,
        bytes_accessed=4 * (n + 2 * c2 + n * c2),
    )

    out_t = pl.pallas_call(
        _classifyy_kernel,
        out_shape=jax.ShapeDtypeStruct((c2, n), out_dtype),
        grid_spec=pltpu.PrefetchScalarGridSpec(
            num_scalar_prefetch=0,
            grid=grid,
            in_specs=[
                pl.BlockSpec((1, tile_n), lambda i: (0, i)),   # x^T tile (lane-dense)
                pl.BlockSpec((c2, 1), lambda i: (0, 0)),       # weight (block-resident)
                pl.BlockSpec((c2, 1), lambda i: (0, 0)),       # bias   (block-resident)
            ],
            out_specs=pl.BlockSpec((c2, tile_n), lambda i: (0, i)),
        ),
        compiler_params=pltpu.CompilerParams(
            dimension_semantics=("parallel",),
            vmem_limit_bytes=32 * 1024 * 1024,
        ),
        cost_estimate=cost,
    )(x_t, w_col, b_col)

    # Layout plumbing back to PyTorch convention: (c2, N) -> (..., c2).
    return out_t.T.reshape(*lead, c2)


def _ref_forward(x, weight, bias):
    # Pure-JAX reference mirroring torch.nn.Linear semantics.
    return jnp.matmul(x, weight.T) + bias


if __name__ == "__main__":
    key = jax.random.PRNGKey(0)
    kx, kw, kb = jax.random.split(key, 3)

    # Small shapes consistent with the module: fc1 = Linear(1, c2).
    batch, seq, c2 = 2, 8, 32
    x = jax.random.normal(kx, (batch, seq, 1), dtype=jnp.float32)

    # Deterministic parameter init.
    weight = jax.random.uniform(kw, (c2, 1), jnp.float32, -1.0, 1.0)
    bias = jax.random.uniform(kb, (c2,), jnp.float32, -1.0, 1.0)

    out = classifyy_forward(x, weight, bias)
    out = jax.block_until_ready(out)

    ref = _ref_forward(x, weight, bias)
    assert out.shape == (batch, seq, c2), out.shape
    assert out.dtype == jnp.float32, out.dtype
    assert jnp.allclose(out, ref, atol=1e-5, rtol=1e-5), "mismatch vs reference"

    print("KERNEL_OK")
</pallas_src>

<mosaic_0001>
module attributes {stable_mosaic.version = 11 : i64} {
  func.func @_classifyy_kernel(%arg0: i32, %arg1: memref<1x128xf32, #tpu.memory_space<vmem>>, %arg2: memref<32x1xf32, #tpu.memory_space<vmem>>, %arg3: memref<32x1xf32, #tpu.memory_space<vmem>>, %arg4: memref<32x128xf32, #tpu.memory_space<vmem>>) attributes {dimension_semantics = [#tpu.dimension_semantics<parallel>], iteration_bounds = array<i64: 1>, scalar_prefetch = 0 : i64, scratch_operands = 0 : i64, tpu.core_type = #tpu.core_type<tc>, window_params = [{transform_indices = @transform_0, window_bounds = array<i64: 1, 128>}, {pipeline_mode = #tpu.pipeline_mode<synchronous>, transform_indices = @transform_1, window_bounds = array<i64: 32, 1>}, {pipeline_mode = #tpu.pipeline_mode<synchronous>, transform_indices = @transform_2, window_bounds = array<i64: 32, 1>}, {transform_indices = @transform_3, window_bounds = array<i64: 32, 128>}]} {
    %c0 = arith.constant 0 : index
    %c0_0 = arith.constant 0 : index
    %0 = vector.load %arg1[%c0, %c0_0] : memref<1x128xf32, #tpu.memory_space<vmem>>, vector<1x128xf32>
    %c0_1 = arith.constant 0 : index
    %c0_2 = arith.constant 0 : index
    %1 = vector.load %arg2[%c0_1, %c0_2] : memref<32x1xf32, #tpu.memory_space<vmem>>, vector<32x1xf32>
    %c0_3 = arith.constant 0 : index
    %c0_4 = arith.constant 0 : index
    %2 = vector.load %arg3[%c0_3, %c0_4] : memref<32x1xf32, #tpu.memory_space<vmem>>, vector<32x1xf32>
    %3 = vector.broadcast %1 : vector<32x1xf32> to vector<32x128xf32>
    %4 = vector.broadcast %0 : vector<1x128xf32> to vector<32x128xf32>
    %5 = arith.mulf %3, %4 : vector<32x128xf32>
    %6 = vector.broadcast %2 : vector<32x1xf32> to vector<32x128xf32>
    %7 = arith.addf %5, %6 : vector<32x128xf32>
    %c0_5 = arith.constant 0 : index
    %c0_6 = arith.constant 0 : index
    %8 = vector.load %arg4[%c0_5, %c0_6] : memref<32x128xf32, #tpu.memory_space<vmem>>, vector<32x128xf32>
    tpu.vector_store %arg4[%c0_5, %c0_6], %7 {strides = array<i32>} : memref<32x128xf32, #tpu.memory_space<vmem>>, vector<32x128xf32>,
    return
  }
  func.func @transform_0(%arg0: i32) -> (i32, i32) {
    %c0_i32 = arith.constant 0 : i32
    %c0_i32_0 = arith.constant 0 : i32
    return %c0_i32, %arg0 : i32, i32
  }
  func.func @transform_1(%arg0: i32) -> (i32, i32) {
    %c0_i32 = arith.constant 0 : i32
    %c0_i32_0 = arith.constant 0 : i32
    %c0_i32_1 = arith.constant 0 : i32
    return %c0_i32, %c0_i32_0 : i32, i32
  }
  func.func @transform_2(%arg0: i32) -> (i32, i32) {
    %c0_i32 = arith.constant 0 : i32
    %c0_i32_0 = arith.constant 0 : i32
    %c0_i32_1 = arith.constant 0 : i32
    return %c0_i32, %c0_i32_0 : i32, i32
  }
  func.func @transform_3(%arg0: i32) -> (i32, i32) {
    %c0_i32 = arith.constant 0 : i32
    %c0_i32_0 = arith.constant 0 : i32
    return %c0_i32, %arg0 : i32, i32
  }
}

</mosaic_0001>

<bundles_post_ra>
// kernel: tpu_custom_call.1
= control target key start
LH: loop header
LB: loop body
LE: loop exit
PB: predicated region body
PF: predicated region fallthrough
CT: control target
= control target key end

     0   :  { %v89_v0 = vmov 0   ;;  %s149_s1 = inlined_call_operand.vmem [shape: f32[32,1], index: 1, kind: input, shape index: {}]   ;;  %s150_s2 = inlined_call_operand.vmem [shape: f32[32,1], index: 2, kind: input, shape index: {}]   ;;  %s151_s0 = inlined_call_operand.vmem [shape: f32[1,16], index: 0, kind: input, shape index: {}]   ;;  %s152_s3 = inlined_call_operand.vmem [shape: f32[32,16], index: 3, kind: output, shape index: {}]  }
   0x1   :  { %88 = vset.pattern.permute.xlu1 %v89_v0  ;;  %87 = vset.pattern.permute.xlu0 %v89_v0  ;;  %v17_v1 = vld [vmem:[%s149_s1 + $0x10] sm:$0xff]  ;;  %v15_v2 = vld [vmem:[%s149_s1] sm:$0xff]  ;;  %v18_v3 = vld [vmem:[%s149_s1 + $0x18] sm:$0xff] }
   0x2   :  { %35 = vperm.xlu1 %88, %v17_v1   ;;  %25 = vperm.xlu0 %87, %v15_v2   ;;  %v16_v4 = vld [vmem:[%s149_s1 + $0x8] sm:$0xff]  ;;  %v19_v6 = vld [vmem:[%s150_s2] sm:$0xff]  ;;  %v22_v7 = vld [vmem:[%s150_s2 + $0x18] sm:$0xff] }
   0x3   :  { %v20_v5 = vld [vmem:[%s150_s2 + $0x8] sm:$0xff]  ;;  %v21_v8 = vld [vmem:[%s150_s2 + $0x10] sm:$0xff]  ;;  %v85_v11 = vld [vmem:[%s151_s0] ss:$0 sm:$0xff] }
   0x6   :  { %40 = vperm.xlu1 %88, %v18_v3   ;;  %30 = vperm.xlu0 %87, %v16_v4  }
   0xa   :  { %60 = vperm.xlu1 %88, %v20_v5   ;;  %55 = vperm.xlu0 %87, %v19_v6  }
   0xe   :  { %70 = vperm.xlu1 %88, %v22_v7   ;;  %65 = vperm.xlu0 %87, %v21_v8  }
  0x81   :  { %v36_v9 = vpop.permute.xlu1 %35  ;;  %v26_v10 = vpop.permute.xlu0 %25 }
  0x82   :  { %v49_v14 = vmul.f32 %v85_v11, %v26_v10  ;;  %v51_v20 = vmul.f32 %v85_v11, %v36_v9 }
  0x85   :  { %v41_v12 = vpop.permute.xlu1 %40  ;;  %v31_v13 = vpop.permute.xlu0 %30 }
  0x86   :  { %v50_v15 = vmul.f32 %v85_v11, %v31_v13  ;;  %v52_v21 = vmul.f32 %v85_v11, %v41_v12 }
  0x89   :  { %v61_v16 = vpop.permute.xlu1 %60  ;;  %v56_v17 = vpop.permute.xlu0 %55 }
  0x8a   :  { %v74_v18 = vadd.f32 %v61_v16, %v50_v15  ;;  %v73_v19 = vadd.f32 %v56_v17, %v49_v14 }
  0x8c   :  { %78 = vst [vmem:[%s152_s3 + $0x8] sm:$0xff] %v74_v18  ;;  %77 = vst [vmem:[%s152_s3] sm:$0xff] %v73_v19 }
  0x8d   :  { %v71_v22 = vpop.permute.xlu1 %70  ;;  %v66_v23 = vpop.permute.xlu0 %65 }
  0x8e   :  { %v76_v24 = vadd.f32 %v71_v22, %v52_v21  ;;  %v75_v25 = vadd.f32 %v66_v23, %v51_v20 }
  0x90   :  { %80 = vst [vmem:[%s152_s3 + $0x18] sm:$0xff] %v76_v24  ;;  %79 = vst [vmem:[%s152_s3 + $0x10] sm:$0xff] %v75_v25 }

</bundles_post_ra>
